<compile_context>
chip_gen: v7x
topology: tpu7x:2x2x1
jax: 0.10.0
libtpu: 0.0.40
codegen_flags: <defaults>
</compile_context>

<pallas_src>
import jax
import jax.numpy as jnp
from jax.experimental import pallas as pl
from jax.experimental.pallas import tpu as pltpu


def _token_cls_head_kernel(x_ref, w_ref, b_ref, o_ref):
    """One grid step: classification head for a (tb batch rows) x (ts tokens) tile.

    x_ref: (tb, ts, H) activations, native dtype (e.g. bf16).
    w_ref: (L, H)      classifier weight, pre-cast to the activation dtype,
                       VMEM-resident across all grid steps.
    b_ref: (L, 1)      classifier bias (f32), broadcasts over the lane (seq) dim.
    o_ref: (tb, L, ts) logits tile in the transposed [B, L, S] layout
                       (stores are lane-dense along the sequence axis).
    """
    tb, ts, h = x_ref.shape
    # Single fused contraction per grid step: native-dtype MXU operands,
    # f32 accumulation.  (No per-row Python loop of tiny matmuls.)
    if tb == 1:
        x2 = x_ref[0]                                # (ts, h) -- plain squeeze
    else:
        x2 = x_ref[...].reshape(tb * ts, h)          # merge (batch, seq); lanes stay on h
    y = jax.lax.dot_general(
        w_ref[...], x2,
        dimension_numbers=(((1,), (1,)), ((), ())),
        preferred_element_type=jnp.float32)          # (L, tb*ts), f32 accum on the MXU
    b = b_ref[...]                                   # (L, 1) -> broadcasts over seq lanes
    for r in range(tb):                              # static store loop only (tb <= 16)
        o_ref[r] = (y[:, r * ts:(r + 1) * ts] + b).astype(o_ref.dtype)


def _vmem_budget():
    """(activation-tile byte target, vmem_limit_bytes) from actual VMEM capacity."""
    try:
        cap = pltpu.get_tpu_info().vmem_capacity_bytes
    except Exception:
        cap = 64 * 1024 * 1024                       # conservative fallback (v7x-sized)
    if cap >= 100 * 1024 * 1024:                     # v5e / v6e: 128 MiB physical
        return 12 * 1024 * 1024, 80 * 1024 * 1024
    return 7 * 1024 * 1024, 48 * 1024 * 1024         # v7x: 64 MiB physical


def _pick_tiles(batch, seq, hidden, itemsize, act_target_bytes):
    """Pick (tb, ts): batch rows / sequence tokens per grid step."""
    # Sequence tile: full S, or a 128-multiple divisor of S when one full-S
    # row slab alone would blow the byte target.
    ts = seq
    if seq % 128 == 0:
        divisors = [d for d in range(128, seq + 1, 128) if seq % d == 0]
        fitting = [d for d in divisors if d * hidden * itemsize <= act_target_bytes]
        ts = max(fitting) if fitting else 128
    # Batch tile fills the remaining byte budget (cap the store-loop unroll).
    per_row = max(1, ts * hidden * itemsize)
    tb = max(1, min(batch, 16, act_target_bytes // per_row))
    if ts % 8 != 0:
        tb = 1        # keep the in-kernel (tb, ts, H) -> (tb*ts, H) merge a pure squeeze
    # Keep >= 2 grid steps when there is enough work (v7x has 2 TensorCores).
    if pl.cdiv(batch, tb) * pl.cdiv(seq, ts) == 1 and batch * seq * hidden * itemsize >= (2 << 20):
        if seq % 256 == 0:
            ts = seq // 2
            tb = max(1, min(batch, 16, act_target_bytes // max(1, ts * hidden * itemsize)))
        elif batch >= 2:
            tb = pl.cdiv(batch, 2)
    return int(tb), int(ts)


def roberta_token_classification_head(last_hidden_state: jax.Array,
                                      weight: jax.Array,
                                      bias: jax.Array,
                                      *,
                                      out_dtype=jnp.float32,
                                      batch_block: int | None = None,
                                      seq_block: int | None = None) -> jax.Array:
    """linear(last_hidden_state).transpose(1, 2) as a single Pallas kernel.

    last_hidden_state: [B, S, H]  (any float dtype; bf16 recommended)
    weight:            [L, H]     (nn.Linear weight layout: [out, in]); cast to
                                  the activation dtype once here (MXU-native path)
    bias:              [L]
    returns:           [B, L, S]  logits (out_dtype, default f32)
    """
    B, S, H = last_hidden_state.shape
    L, H2 = weight.shape
    assert H == H2, "weight shape must be [num_labels, hidden]"

    act_dtype = last_hidden_state.dtype
    w_cast = weight.astype(act_dtype)                   # one-time cast, outside the kernel
    bias2d = bias.astype(jnp.float32).reshape(L, 1)

    act_target, vmem_limit = _vmem_budget()
    tb_auto, ts_auto = _pick_tiles(B, S, H, act_dtype.itemsize, act_target)
    tb = batch_block if batch_block is not None else tb_auto
    ts = seq_block if seq_block is not None else ts_auto
    if ts != S:
        assert ts % 128 == 0 and S % ts == 0, "seq_block must divide S and be a multiple of 128"
    tb = max(1, min(tb, B))

    grid = (pl.cdiv(B, tb), pl.cdiv(S, ts))

    flops = 2 * B * S * H * L
    bytes_accessed = (B * S * H * act_dtype.itemsize
                      + L * H * act_dtype.itemsize
                      + L * 4
                      + B * L * S * jnp.dtype(out_dtype).itemsize)

    return pl.pallas_call(
        _token_cls_head_kernel,
        out_shape=jax.ShapeDtypeStruct((B, L, S), out_dtype),
        grid_spec=pltpu.PrefetchScalarGridSpec(
            num_scalar_prefetch=0,
            grid=grid,
            in_specs=[
                # native-dtype activations, (tb, ts) tile per step
                pl.BlockSpec((tb, ts, H), lambda i, j: (i, j, 0)),
                # weight / bias: same block every step -> stays resident in VMEM
                pl.BlockSpec((L, H), lambda i, j: (0, 0)),
                pl.BlockSpec((L, 1), lambda i, j: (0, 0)),
            ],
            out_specs=pl.BlockSpec((tb, L, ts), lambda i, j: (i, 0, j)),
        ),
        compiler_params=pltpu.CompilerParams(
            dimension_semantics=("parallel", "parallel"),
            vmem_limit_bytes=vmem_limit,
        ),
        cost_estimate=pl.CostEstimate(
            flops=flops, transcendentals=0, bytes_accessed=bytes_accessed),
    )(last_hidden_state, w_cast, bias2d)


if __name__ == "__main__":
    key = jax.random.PRNGKey(0)
    k1, k2, k3 = jax.random.split(key, 3)

    # Small shapes consistent with the module: batch=2, seq=8, hidden=32, labels=5.
    B, S, H, L = 2, 8, 32, 5

    # last_hidden_state of the (untranslatable) RoBERTa encoder, in bf16 to
    # exercise the native-dtype MXU path.
    last_hidden = jax.random.normal(k1, (B, S, H), dtype=jnp.float32).astype(jnp.bfloat16)
    weight = jax.random.normal(k2, (L, H), dtype=jnp.float32) * 0.05
    bias = jax.random.normal(k3, (L,), dtype=jnp.float32) * 0.05

    out = roberta_token_classification_head(last_hidden, weight, bias)
    out = jax.block_until_ready(out)

    # Pure-JAX reference: linear then transpose(1, 2), matching the PyTorch head.
    # The kernel uses the weight cast to the activation dtype (bf16), so the
    # reference compares against the same bf16-rounded operands in f32 math.
    x32 = last_hidden.astype(jnp.float32)
    w32 = weight.astype(jnp.bfloat16).astype(jnp.float32)
    ref = jnp.einsum("bsh,lh->bsl", x32, w32,
                     precision=jax.lax.Precision.HIGHEST) + bias      # [B, S, L]
    ref = jnp.transpose(ref, (0, 2, 1))                               # [B, L, S]

    assert out.shape == (B, L, S)
    assert jnp.allclose(out, ref, atol=1e-3, rtol=1e-3), float(jnp.max(jnp.abs(out - ref)))

    print("KERNEL_OK")
</pallas_src>

<mosaic_0001>
module attributes {stable_mosaic.version = 11 : i64} {
  func.func @_token_cls_head_kernel(%arg0: i32, %arg1: i32, %arg2: memref<2x8x32xbf16, #tpu.memory_space<vmem>>, %arg3: memref<5x32xbf16, #tpu.memory_space<vmem>>, %arg4: memref<5x1xf32, #tpu.memory_space<vmem>>, %arg5: memref<2x5x8xf32, #tpu.memory_space<vmem>>) attributes {dimension_semantics = [#tpu.dimension_semantics<parallel>, #tpu.dimension_semantics<parallel>], iteration_bounds = array<i64: 1, 1>, scalar_prefetch = 0 : i64, scratch_operands = 0 : i64, tpu.core_type = #tpu.core_type<tc>, window_params = [{transform_indices = @transform_0, window_bounds = array<i64: 2, 8, 32>}, {pipeline_mode = #tpu.pipeline_mode<synchronous>, transform_indices = @transform_1, window_bounds = array<i64: 5, 32>}, {pipeline_mode = #tpu.pipeline_mode<synchronous>, transform_indices = @transform_2, window_bounds = array<i64: 5, 1>}, {transform_indices = @transform_3, window_bounds = array<i64: 2, 5, 8>}]} {
    %c0 = arith.constant 0 : index
    %c0_0 = arith.constant 0 : index
    %c0_1 = arith.constant 0 : index
    %0 = vector.load %arg2[%c0, %c0_0, %c0_1] : memref<2x8x32xbf16, #tpu.memory_space<vmem>>, vector<2x8x32xbf16>
    %1 = vector.shape_cast %0 : vector<2x8x32xbf16> to vector<16x32xbf16>
    %c0_2 = arith.constant 0 : index
    %c0_3 = arith.constant 0 : index
    %2 = vector.load %arg3[%c0_2, %c0_3] : memref<5x32xbf16, #tpu.memory_space<vmem>>, vector<5x32xbf16>
    %cst = arith.constant dense<0.000000e+00> : vector<5x16xf32>
    %3 = tpu.matmul %2, %1, %cst {dimension_numbers = #tpu.dot_dimension_numbers<[1], [1], [0], [0], [0, 0, 1, 0], [], []>} : vector<5x32xbf16>, vector<16x32xbf16>, vector<5x16xf32> -> vector<5x16xf32>
    %c0_4 = arith.constant 0 : index
    %c0_5 = arith.constant 0 : index
    %4 = vector.load %arg4[%c0_4, %c0_5] : memref<5x1xf32, #tpu.memory_space<vmem>>, vector<5x1xf32>
    %5 = vector.extract_strided_slice %3 {offsets = [0, 0], sizes = [5, 8], strides = [1, 1]} : vector<5x16xf32> to vector<5x8xf32>
    %6 = vector.broadcast %4 : vector<5x1xf32> to vector<5x8xf32>
    %7 = arith.addf %5, %6 : vector<5x8xf32>
    %c0_6 = arith.constant 0 : index
    %c0_7 = arith.constant 0 : index
    %c0_8 = arith.constant 0 : index
    %8 = vector.load %arg5[%c0_6, %c0_7, %c0_8] : memref<2x5x8xf32, #tpu.memory_space<vmem>>, vector<1x5x8xf32>
    %9 = vector.shape_cast %8 : vector<1x5x8xf32> to vector<5x8xf32>
    %10 = vector.shape_cast %7 : vector<5x8xf32> to vector<1x5x8xf32>
    tpu.vector_store %arg5[%c0_6, %c0_7, %c0_8], %10 {strides = array<i32>} : memref<2x5x8xf32, #tpu.memory_space<vmem>>, vector<1x5x8xf32>,
    %11 = vector.extract_strided_slice %3 {offsets = [0, 8], sizes = [5, 8], strides = [1, 1]} : vector<5x16xf32> to vector<5x8xf32>
    %12 = vector.broadcast %4 : vector<5x1xf32> to vector<5x8xf32>
    %13 = arith.addf %11, %12 : vector<5x8xf32>
    %c1 = arith.constant 1 : index
    %c0_9 = arith.constant 0 : index
    %c0_10 = arith.constant 0 : index
    %14 = vector.load %arg5[%c1, %c0_9, %c0_10] : memref<2x5x8xf32, #tpu.memory_space<vmem>>, vector<1x5x8xf32>
    %15 = vector.shape_cast %14 : vector<1x5x8xf32> to vector<5x8xf32>
    %16 = vector.shape_cast %13 : vector<5x8xf32> to vector<1x5x8xf32>
    tpu.vector_store %arg5[%c1, %c0_9, %c0_10], %16 {strides = array<i32>} : memref<2x5x8xf32, #tpu.memory_space<vmem>>, vector<1x5x8xf32>,
    return
  }
  func.func @transform_0(%arg0: i32, %arg1: i32) -> (i32, i32, i32) {
    %c0_i32 = arith.constant 0 : i32
    %c0_i32_0 = arith.constant 0 : i32
    return %arg0, %arg1, %c0_i32 : i32, i32, i32
  }
  func.func @transform_1(%arg0: i32, %arg1: i32) -> (i32, i32) {
    %c0_i32 = arith.constant 0 : i32
    %c0_i32_0 = arith.constant 0 : i32
    %c0_i32_1 = arith.constant 0 : i32
    return %c0_i32, %c0_i32_0 : i32, i32
  }
  func.func @transform_2(%arg0: i32, %arg1: i32) -> (i32, i32) {
    %c0_i32 = arith.constant 0 : i32
    %c0_i32_0 = arith.constant 0 : i32
    %c0_i32_1 = arith.constant 0 : i32
    return %c0_i32, %c0_i32_0 : i32, i32
  }
  func.func @transform_3(%arg0: i32, %arg1: i32) -> (i32, i32, i32) {
    %c0_i32 = arith.constant 0 : i32
    %c0_i32_0 = arith.constant 0 : i32
    return %arg0, %c0_i32, %arg1 : i32, i32, i32
  }
}

</mosaic_0001>

<bundles_post_ra>
// kernel: tpu_custom_call.1
= control target key start
LH: loop header
LB: loop body
LE: loop exit
PB: predicated region body
PF: predicated region fallthrough
CT: control target
= control target key end

     0   :  { %vm23_vm0 = vcmask 261120   ;;  %v106_v0 = vmov 0.0   ;;  %vm107_vm1 = vmmov 0   ;;  %v108_v2 = vmov 0   ;;  %s145_s0 = inlined_call_operand.vmem [shape: bf16[2,8,32], index: 0, kind: input, shape index: {}]   ;;  %s146_s2 = inlined_call_operand.vmem [shape: f32[5,1], index: 2, kind: input, shape index: {}]   ;;  %s147_s1 = inlined_call_operand.vmem [shape: bf16[5,32], index: 1, kind: input, shape index: {}]   ;;  %s148_s3 = inlined_call_operand.vmem [shape: f32[2,5,8], index: 3, kind: output, shape index: {}]  }
   0x1   :  { %94 = vmatprep.subr.bf16.mxu0 %v106_v0  ;;  %v105_v1 = vld [vmem:[%s145_s0] sm:$0xff]   ;;  %96 = vmatprep.mubr.msk.bf16.mxu0 %vm107_vm1, %v106_v0  ;;  %vm77_vm2 = vcmask 61440   ;;  %s109_s0 = smov 120  }
   0x2   :  { %104 = vset.pattern.permute.xlu0 %v108_v2  ;;  %v70_v3 = vld [vmem:[%s146_s2] sm:$0x1f]  ;;  %v28_v4 = vsel %vm23_vm0, %v105_v1, 0 }
   0x3   :  { %73 = vperm.xlu0 %104, %v70_v3   ;;  %95 = vmatpush3.bf16.xpose.msra.mxu0 %v28_v4  ;;  %v17_v5 = vld [vmem:[%s147_s1] sm:$0x7] }
   0xa   :  { %97 = vmatmul.mubr.msk.bf16.vlgmr.msra.gmra.mrb[0].mxu0 %vm23_vm0, %v17_v5 }
  0x82   :  { %v74_v6 = vpop.permute.xlu0 %73 }
  0xdd   :  { %v64_v7 = vpop.f32.mrb[0].mxu0 }
  0xde   :  { %v76_v8 = vadd.f32 %v74_v6, %v64_v7  ;;  %v98_v9 = vpop.f32.mrb[1].mxu0 }
  0xdf   :  { %v67_v10 = vpop.f32.mrb[2].mxu0 }
  0xe0   :  { %80 = vrot.lane.b32.xlu0 %v76_v8, %s109_s0  ;;  %v99_v11 = vpop.f32.mrb[3].mxu0  ;;  %78 = vst.msk [vmem:[%s148_s3] sm:$0x1f] %vm77_vm2, %v76_v8 }
 0x152   :  { %v81_v12 = vpop.permute.xlu0 %80 }
 0x153   :  { %91 = vst.msk [vmem:[%s148_s3 + $0x8] sm:$0x1f] %vm77_vm2, %v81_v12 }

</bundles_post_ra>
